<compile_context>
chip_gen: v7x
topology: tpu7x:2x2x1
jax: 0.10.0
libtpu: 0.0.40
codegen_flags: <defaults>
</compile_context>

<pallas_src>
import functools

import jax
import jax.numpy as jnp
import numpy as np
from jax.experimental import pallas as pl
from jax.experimental.pallas import tpu as pltpu


def nn_i_kernel(x_ref, w_ref, wf_ref, pib_ref, y_ref):
    # x_ref:  (tm, Din)
    # w_ref:  (Din, Df*Dm)   encoder weight tiled Df times along columns
    # wf_ref: (1, Df*Dm)     flattened (Df, Dm) weights_freq
    # pib_ref:(1, Df*Dm)     flattened pi * bias_freq
    # y_ref:  (tm, Df*Dm)
    h = jnp.dot(x_ref[...], w_ref[...], preferred_element_type=jnp.float32)
    y_ref[...] = h * wf_ref[...] + pib_ref[...]


@functools.partial(jax.jit, static_argnames=("tm",))
def nn_i_forward(x, w_enc, weights_freq, bias_freq, *, tm=512):
    """x: (B, N, Din); w_enc: (Dm, Din) [PyTorch Linear weight];
    weights_freq / bias_freq: (1, 1, Dm, Df)."""
    B, N, Din = x.shape
    Dm = w_enc.shape[0]
    Df = weights_freq.shape[-1]
    M = B * N
    out_dim = Df * Dm

    # Effective row tile: at most `tm`, at least 8; pad M to a multiple of it.
    tm_eff = min(tm, max(8, ((M + 7) // 8) * 8))
    M_pad = ((M + tm_eff - 1) // tm_eff) * tm_eff

    x2 = x.reshape(M, Din).astype(jnp.float32)
    if M_pad != M:
        x2 = jnp.pad(x2, ((0, M_pad - M), (0, 0)))

    # Parameter prep (all tiny, done once in the wrapper by XLA):
    w = w_enc.T.astype(jnp.float32)                  # (Din, Dm)
    w_tiled = jnp.tile(w, (1, Df))                   # (Din, Df*Dm): col f*Dm+d == W[:, d]
    wf_flat = (
        weights_freq.reshape(Dm, Df).T.reshape(1, out_dim).astype(jnp.float32)
    )                                                # [0, f*Dm+d] = weights_freq[d, f]
    pib_flat = (
        (jnp.pi * bias_freq.reshape(Dm, Df).T).reshape(1, out_dim).astype(jnp.float32)
    )

    y = pl.pallas_call(
        nn_i_kernel,
        out_shape=jax.ShapeDtypeStruct((M_pad, out_dim), jnp.float32),
        grid_spec=pl.GridSpec(
            grid=(M_pad // tm_eff,),
            in_specs=[
                pl.BlockSpec((tm_eff, Din), lambda i: (i, 0)),
                # Loop-invariant operands: constant index_map -> loaded once,
                # stay VMEM-resident across the whole grid.
                pl.BlockSpec((Din, out_dim), lambda i: (0, 0)),
                pl.BlockSpec((1, out_dim), lambda i: (0, 0)),
                pl.BlockSpec((1, out_dim), lambda i: (0, 0)),
            ],
            out_specs=pl.BlockSpec((tm_eff, out_dim), lambda i: (i, 0)),
        ),
        compiler_params=pltpu.CompilerParams(
            dimension_semantics=("parallel",),
        ),
    )(x2, w_tiled, wf_flat, pib_flat)

    y = y[:M].reshape(B, N, out_dim)
    # Second output is a pure broadcast of the (transposed, flattened)
    # weights_freq — no need to burn HBM write bandwidth in the kernel.
    freq = jnp.broadcast_to(wf_flat.reshape(1, 1, out_dim), (B, N, out_dim))
    return y, freq


def nn_i_reference(x, w_enc, weights_freq, bias_freq):
    """Pure-JAX mirror of the PyTorch forward (for verification)."""
    B, N, _ = x.shape
    Dm = w_enc.shape[0]
    y = jnp.einsum("bni,mi->bnm", x, w_enc)                      # enc, no bias
    y = y[..., None] * weights_freq + jnp.pi * bias_freq         # (B,N,Dm,Df)
    y = jnp.transpose(y, (0, 1, 3, 2)).reshape(B, N, -1)
    f = jnp.broadcast_to(weights_freq, (B, N, Dm, weights_freq.shape[-1]))
    f = jnp.transpose(f, (0, 1, 3, 2)).reshape(B, N, -1)
    return y, f


if __name__ == "__main__":
    # Module hyperparameters (small, consistent with the forward pass).
    input_dim = 4
    d_model = 32
    d_freq = 4
    nb_hidden_layers = 3  # self.layers / self.dec are unused in forward
    B, N = 2, 8

    key = jax.random.PRNGKey(0)
    k_x, k_w, k_wf, k_bf = jax.random.split(key, 4)

    x = jax.random.normal(k_x, (B, N, input_dim), dtype=jnp.float32)
    # nn.Linear(input_dim, d_model, bias=False): weight shape (d_model, input_dim)
    w_enc = jax.random.normal(k_w, (d_model, input_dim), dtype=jnp.float32) * 0.1
    # PyTorch __init__ zero-initializes these; use deterministic non-zero values
    # so the numerical check is non-trivial.
    weights_freq = jax.random.normal(k_wf, (1, 1, d_model, d_freq), dtype=jnp.float32)
    bias_freq = jax.random.normal(k_bf, (1, 1, d_model, d_freq), dtype=jnp.float32)

    y, freq = nn_i_forward(x, w_enc, weights_freq, bias_freq)
    y = jax.block_until_ready(y)
    freq = jax.block_until_ready(freq)

    y_ref, freq_ref = nn_i_reference(x, w_enc, weights_freq, bias_freq)

    assert y.shape == (B, N, d_freq * d_model), y.shape
    assert freq.shape == (B, N, d_freq * d_model), freq.shape
    np.testing.assert_allclose(np.asarray(y), np.asarray(y_ref), rtol=1e-5, atol=1e-5)
    np.testing.assert_allclose(np.asarray(freq), np.asarray(freq_ref), rtol=1e-5, atol=1e-5)

    print("KERNEL_OK")
</pallas_src>

<mosaic_0001>
module attributes {stable_mosaic.version = 11 : i64} {
  func.func @nn_i_kernel(%arg0: i32, %arg1: memref<16x4xf32, #tpu.memory_space<vmem>>, %arg2: memref<4x128xf32, #tpu.memory_space<vmem>>, %arg3: memref<1x128xf32, #tpu.memory_space<vmem>>, %arg4: memref<1x128xf32, #tpu.memory_space<vmem>>, %arg5: memref<16x128xf32, #tpu.memory_space<vmem>>) attributes {dimension_semantics = [#tpu.dimension_semantics<parallel>], iteration_bounds = array<i64: 1>, scalar_prefetch = 0 : i64, scratch_operands = 0 : i64, tpu.core_type = #tpu.core_type<tc>, window_params = [{transform_indices = @transform_0, window_bounds = array<i64: 16, 4>}, {pipeline_mode = #tpu.pipeline_mode<synchronous>, transform_indices = @transform_1, window_bounds = array<i64: 4, 128>}, {pipeline_mode = #tpu.pipeline_mode<synchronous>, transform_indices = @transform_2, window_bounds = array<i64: 1, 128>}, {pipeline_mode = #tpu.pipeline_mode<synchronous>, transform_indices = @transform_3, window_bounds = array<i64: 1, 128>}, {transform_indices = @transform_4, window_bounds = array<i64: 16, 128>}]} {
    %c0 = arith.constant 0 : index
    %c0_0 = arith.constant 0 : index
    %0 = vector.load %arg1[%c0, %c0_0] : memref<16x4xf32, #tpu.memory_space<vmem>>, vector<16x4xf32>
    %c0_1 = arith.constant 0 : index
    %c0_2 = arith.constant 0 : index
    %1 = vector.load %arg2[%c0_1, %c0_2] : memref<4x128xf32, #tpu.memory_space<vmem>>, vector<4x128xf32>
    %cst = arith.constant dense<0.000000e+00> : vector<16x128xf32>
    %2 = tpu.matmul %0, %1, %cst {dimension_numbers = #tpu.dot_dimension_numbers<[1], [0], [0], [1], [0, 0, 1, 1], [], []>} : vector<16x4xf32>, vector<4x128xf32>, vector<16x128xf32> -> vector<16x128xf32>
    %c0_3 = arith.constant 0 : index
    %c0_4 = arith.constant 0 : index
    %3 = vector.load %arg3[%c0_3, %c0_4] : memref<1x128xf32, #tpu.memory_space<vmem>>, vector<1x128xf32>
    %4 = vector.broadcast %3 : vector<1x128xf32> to vector<16x128xf32>
    %5 = arith.mulf %2, %4 : vector<16x128xf32>
    %c0_5 = arith.constant 0 : index
    %c0_6 = arith.constant 0 : index
    %6 = vector.load %arg4[%c0_5, %c0_6] : memref<1x128xf32, #tpu.memory_space<vmem>>, vector<1x128xf32>
    %7 = vector.broadcast %6 : vector<1x128xf32> to vector<16x128xf32>
    %8 = arith.addf %5, %7 : vector<16x128xf32>
    %c0_7 = arith.constant 0 : index
    %c0_8 = arith.constant 0 : index
    %9 = vector.load %arg5[%c0_7, %c0_8] : memref<16x128xf32, #tpu.memory_space<vmem>>, vector<16x128xf32>
    tpu.vector_store %arg5[%c0_7, %c0_8], %8 {strides = array<i32>} : memref<16x128xf32, #tpu.memory_space<vmem>>, vector<16x128xf32>,
    return
  }
  func.func @transform_0(%arg0: i32) -> (i32, i32) {
    %c0_i32 = arith.constant 0 : i32
    %c0_i32_0 = arith.constant 0 : i32
    return %arg0, %c0_i32 : i32, i32
  }
  func.func @transform_1(%arg0: i32) -> (i32, i32) {
    %c0_i32 = arith.constant 0 : i32
    %c0_i32_0 = arith.constant 0 : i32
    %c0_i32_1 = arith.constant 0 : i32
    return %c0_i32, %c0_i32_0 : i32, i32
  }
  func.func @transform_2(%arg0: i32) -> (i32, i32) {
    %c0_i32 = arith.constant 0 : i32
    %c0_i32_0 = arith.constant 0 : i32
    %c0_i32_1 = arith.constant 0 : i32
    return %c0_i32, %c0_i32_0 : i32, i32
  }
  func.func @transform_3(%arg0: i32) -> (i32, i32) {
    %c0_i32 = arith.constant 0 : i32
    %c0_i32_0 = arith.constant 0 : i32
    %c0_i32_1 = arith.constant 0 : i32
    return %c0_i32, %c0_i32_0 : i32, i32
  }
  func.func @transform_4(%arg0: i32) -> (i32, i32) {
    %c0_i32 = arith.constant 0 : i32
    %c0_i32_0 = arith.constant 0 : i32
    return %arg0, %c0_i32 : i32, i32
  }
}

</mosaic_0001>

<bundles_post_ra>
// kernel: tile.9
= control target key start
LH: loop header
LB: loop body
LE: loop exit
PB: predicated region body
PF: predicated region fallthrough
CT: control target
= control target key end

     0   :  { %vm21_vm0 = vcmask 261120   ;;  %s56_s14 = smov 32   ;;  %s57_s15 = smov 64   ;;  %vm27_vm1 = vcmask 1048320   ;;  %vm33_vm2 = vcmask 785920   ;;  %vm39_vm3 = vcmask 523520   ;;  %s83_s0 = inlined_call_operand.vmem [shape: f32[4,4,32], index: 0, kind: input, shape index: {}]   ;;  %s84_s1 = inlined_call_operand.vmem [shape: f32[4,128], index: 1, kind: output, shape index: {}]  }
   0x1   :  { %v49_v0 = vld [vmem:[%s83_s0 + $0xc] sm:$0xf]  ;;  %v50_v1 = vld [vmem:[%s83_s0 + $0x8] sm:$0xf]  ;;  %v51_v2 = vld [vmem:[%s83_s0 + $0x4] sm:$0xf] }
   0x2   :  { %8 = vst [vmem:[#allocation1 + $0x18] sm:$0xf] %v49_v0  ;;  %13 = vst [vmem:[#allocation1 + $0x10] sm:$0xf] %v50_v1  ;;  %v18_v3 = vld [vmem:[%s83_s0] sm:$0xf] }
   0x3   :  { %17 = vst [vmem:[#allocation1 + $0x8] sm:$0xf] %v51_v2  ;;  %19 = vst [vmem:[#allocation1] sm:$0xf] %v18_v3  ;;  %s55_s0 = smov 96  }
   0xa   :  { %v24_v4 = vld [vmem:[#allocation1 + $0x3] ss:$8 sm:$0xf]   ;;  %v36_v5 = vld [vmem:[#allocation1 + $0x1] ss:$8 sm:$0xf]  }
   0xb   :  { %25 = vrot.lane.b32.xlu0 %v24_v4, %s55_s0  ;;  %v20_v6 = vld [vmem:[#allocation1] ss:$8 sm:$0xf]   ;;  %v30_v7 = vld [vmem:[#allocation1 + $0x2] ss:$8 sm:$0xf]   ;;  %37 = vrot.lane.b32.xlu1 %v36_v5, %s56_s14 }
   0xc   :  { %22 = vst.msk [vmem:[#allocation0] sm:$0xf] %vm21_vm0, %v20_v6  }
   0xf   :  { %31 = vrot.lane.b32.xlu0 %v30_v7, %s57_s15 }
  0x7d   :  { %v26_v8 = vpop.permute.xlu0 %25   ;;  %v38_v9 = vpop.permute.xlu1 %37  }
  0x7e   :  { %28 = vst.msk [vmem:[#allocation0] sm:$0xf] %vm27_vm1, %v26_v8  }
  0x81   :  { %v32_v10 = vpop.permute.xlu0 %31  }
  0x82   :  { %34 = vst.msk [vmem:[#allocation0] sm:$0xf] %vm33_vm2, %v32_v10  }
  0x83   :  { %40 = vst.msk [vmem:[#allocation0] sm:$0xf] %vm39_vm3, %v38_v9  }
  0x8a   :  { %v44_v11 = vld [vmem:[#allocation0] sm:$0xf] }
  0x8b   :  { %46 = vst [vmem:[%s84_s1] sm:$0xf] %v44_v11 }

// kernel: nn_i_forward.1
= control target key start
LH: loop header
LB: loop body
LE: loop exit
PB: predicated region body
PF: predicated region fallthrough
CT: control target
= control target key end

     0   :  { %vm28_vm0 = vcmask 1043456   ;;  %vm21_vm1 = vcmask 31744   ;;  %s238_s0 = inlined_call_operand.vmem [shape: f32[16,4], index: 0, kind: input, shape index: {}]   ;;  %s239_s1 = inlined_call_operand.vmem [shape: f32[4,128], index: 1, kind: input, shape index: {}]   ;;  %s240_s2 = inlined_call_operand.vmem [shape: f32[1,128], index: 2, kind: input, shape index: {}]   ;;  %s241_s3 = inlined_call_operand.vmem [shape: f32[1,128], index: 3, kind: input, shape index: {}]   ;;  %s242_s4 = inlined_call_operand.hbm [shape: f32[16,128], index: 4, kind: output, shape index: {}]  }
   0x1   :  { %v20_v0 = vld [vmem:[%s239_s1] sm:$0xf]  ;;  %v19_v2 = vld [vmem:[%s238_s0 + $0x8] sm:$0xff] }
   0x2   :  { %v18_v1 = vld [vmem:[%s238_s0] sm:$0xff]  ;;  %151 = vmatprep.subr.msk.mxu0 %vm28_vm0, %v20_v0 }
   0x3   :  { %153 = vmatprep.mubr.msk.f32.mxu0 %vm21_vm1, %v18_v1 }
   0x4   :  { %9 = vsyncpa [#allocation3], 0  ;;  %152 = vmatpush3.msk.msra.mxu0 %vm28_vm0, %v20_v0  ;;  %v146_v3 = vld [vmem:[%s240_s2] ss:$0 sm:$0xff]  ;;  %s183_s24 = smov [#allocation2]  }
   0x5   :  { %154 = vmatmul.mubr.msk.f32.vlgmr.msra.gmra.mrb[0].mxu0 %vm21_vm1, %v19_v2  ;;  %v147_v5 = vld [vmem:[%s241_s3] ss:$0 sm:$0xff]  ;;  %s132_s25 = sshll.u32 %s183_s24, 4  ;;  %s133_s25 = int_to_ptr.vmem [resolvable:$true] %s132_s25 }
   0x6   :  { %s159_s0 = scalar_lea.vmem %s133_s25, 256  ;;  %p164_p1 = scmp.lt.s32.totalorder %s133_s25, %s133_s25 }
   0x7   :  { %p160_p0 = scmp.ne.s32.totalorder %s133_s25, %s159_s0  ;;  %p165_p2 = scmp.lt.s32.totalorder %s159_s0, %s159_s0 }
   0x9   :  { %p166_p3 = por %p165_p2, %p164_p1 }
   0xb   :  { %p167_p4 = pnand %p166_p3, %p160_p0 }
  0xd8   :  { %v155_v4 = vpop.f32.mrb[0].mxu0 }
  0xd9   :  { %v115_v6 = vmul.f32 %v155_v4, %v146_v3  ;;  %v98_v7 = vpop.f32.mrb[1].mxu0 }
  0xda   :  { %v114_v8 = vmul.f32 %v146_v3, %v98_v7 }
  0xdb   :  { %v124_v9 = vadd.f32 %v147_v5, %v115_v6 }
  0xdc   :  { %v123_v10 = vadd.f32 %v147_v5, %v114_v8 }
  0xdd   :  { %126 = vst [vmem:[#allocation2 + $0x8] sm:$0xff] %v124_v9 }
  0xde   :  { %125 = vst [vmem:[#allocation2] sm:$0xff] %v123_v10 }
  0xdf   :  { %170 = shalt.err (!%p167_p4)
}
  0xe0   :  { %s171_s3 = scalar_lea.hbm %s242_s4, 256 }
  0xe1   :  { %p172_p5 = scmp.ne.s32.totalorder %s242_s4, %s171_s3  ;;  %p175_p6 = scmp.lt.u32.totalorder %s171_s3, %s242_s4 }
  0xe3   :  { %p177_p7 = pnand %p175_p6, %p172_p5 }
  0xe5   :  { %180 = shalt.err (!%p177_p7)
}
  0xe6   :  { %s184_s5 = smov 128   ;;  %s185_s6 = smov 8  }
  0xe7   :  { %138 = dma.vmem_to_hbm [thread:$0]  %s133_s25, 256, %s242_s4, [#allocation3], %s184_s5, %s184_s5, %s185_s6  }
  0xe8   :  { %181 = dma.done.wait [#allocation3], 256  }
  0xe9   :  { %182 = vsyncadd [#allocation3], 4294967040 }
  0xea   :  { %142 = vsyncpa [#allocation3], 1 }

</bundles_post_ra>
